<compile_context>
chip_gen: v7x
topology: tpu7x:2x2x1
jax: 0.10.0
libtpu: 0.0.40
codegen_flags: <defaults>
</compile_context>

<pallas_src>
import functools

import jax
import jax.numpy as jnp
from jax import lax
from jax.experimental import pallas as pl
from jax.experimental.pallas import tpu as pltpu


def _round_up(v, m):
    return (v + m - 1) // m * m


def _vmem_capacity_bytes():
    try:
        info = pltpu.get_tpu_info()
        return int(getattr(info, "vmem_capacity_bytes", 64 * 2**20))
    except Exception:
        return 64 * 2**20  # conservative fallback (v7x per-core VMEM)


def ffn_kernel(x_ref, w1_ref, b1_ref, w2_ref, b2_ref, o_ref, *scratch, tk):
    """One (M-tile, K-tile) grid step of relu(x @ W1^T + b1) @ W2^T + b2.

    x_ref:  [TM, inp_p]   compute dtype (bf16), resident across the K axis
    w1_ref: [TK, inp_p]   row-contiguous K-tile of linear1.weight (out, in)
    b1_ref: [1, inner_p]  f32, fully resident; sliced per K tile in-kernel
    w2_ref: [TK, inp_p]   row-contiguous K-tile of linear2.weight^T (inner, inp)
    b2_ref: [1, inp_p]    f32, resident
    o_ref:  [TM, inp_p]   output block (same block index across K -> resident)
    scratch: optional f32 [TM, inp_p] accumulator (only when output != f32)
    """
    acc_ref = scratch[0] if scratch else o_ref  # f32 output: accumulate in place
    k = pl.program_id(1)

    @pl.when(k == 0)
    def _():
        acc_ref[...] = jnp.zeros_like(acc_ref)

    # linear1 on this K tile: x @ W1_tile^T -> [TM, TK]; A@B^T (both contracting
    # on the lane dim) is handled by the MXU feed, f32 accumulation on the MXU.
    h = lax.dot_general(x_ref[...], w1_ref[...],
                        (((1,), (1,)), ((), ())),
                        preferred_element_type=jnp.float32)
    koff = pl.multiple_of(k * tk, tk)
    h = jnp.maximum(h + b1_ref[:, pl.ds(koff, tk)], 0.0)  # bias + ReLU in f32 (VPU)
    # TODO(synk): training-mode dropout (pltpu.prng_seed/prng_random_bits mask +
    # 1/(1-p) rescale) omitted -- eval-mode nn.Dropout is the identity.

    # linear2 partial sum: h @ W2^T_tile -> [TM, inp_p]; natural [M,K]@[K,N].
    acc_ref[...] += lax.dot_general(h.astype(w2_ref.dtype), w2_ref[...],
                                    (((1,), (0,)), ((), ())),
                                    preferred_element_type=jnp.float32)

    @pl.when(k == pl.num_programs(1) - 1)
    def _():
        o_ref[...] = (acc_ref[...] + b2_ref[...]).astype(o_ref.dtype)


def prepare_ffn_params(w1, b1, w2, b2, *, compute_dtype=jnp.bfloat16):
    """One-time parameter prep (hoist out of the per-call path / cache it):
    cast to the MXU compute dtype, pre-transpose W2 to [inner, inp] so its
    K-tiles are row-contiguous, and zero-pad both feature dims to multiples of
    128 (lane-dense stores, (8,128)-friendly tiles). Zero padding is exact."""
    inner_dim, inp_dim = w1.shape
    assert w2.shape == (inp_dim, inner_dim)
    inp_p = _round_up(inp_dim, 128)
    inner_p = _round_up(inner_dim, 128)

    w1p = jnp.zeros((inner_p, inp_p), compute_dtype)
    w1p = w1p.at[:inner_dim, :inp_dim].set(w1.astype(compute_dtype))
    w2tp = jnp.zeros((inner_p, inp_p), compute_dtype)
    w2tp = w2tp.at[:inner_dim, :inp_dim].set(w2.T.astype(compute_dtype))
    b1p = jnp.zeros((1, inner_p), jnp.float32).at[0, :inner_dim].set(
        b1.astype(jnp.float32))
    b2p = jnp.zeros((1, inp_p), jnp.float32).at[0, :inp_dim].set(
        b2.astype(jnp.float32))

    return dict(w1=w1p, b1=b1p, w2t=w2tp, b2=b2p,
                inp_dim=inp_dim, inner_dim=inner_dim,
                inp_p=inp_p, inner_p=inner_p, compute_dtype=compute_dtype)


def _pick_tiles(m_p, inner_p, inp_p, compute_itemsize, out_itemsize, f32_out):
    # TM: largest candidate dividing m_p, but prefer leaving >= 2 M tiles so the
    # "parallel" M axis can shard across v7x's two TensorCores.
    tm = None
    for c in (1024, 512, 256, 128, 64, 32, 16, 8):
        if c <= m_p and m_p % c == 0:
            if tm is None:
                tm = c
            if m_p // c >= 2:
                tm = c
                break
    if tm is None:
        tm = m_p

    tk_cands = [c for c in (512, 384, 256, 128) if inner_p % c == 0]
    tk = tk_cands[0]

    # VMEM-aware shrink: stay within ~75% of this generation's VMEM
    # (v5e/v6e: 128 MiB -> ~96 MiB budget; v7x: 64 MiB -> ~48 MiB budget).
    # Shrink TK first (a few extra ~0.35us grid steps) before TM (weights are
    # re-streamed from HBM once per M tile, so TM is the bandwidth lever).
    budget = min(_vmem_capacity_bytes() * 3 // 4, 96 * 2**20)

    def working_set(tm_, tk_):
        ws = 2 * tm_ * inp_p * compute_itemsize       # x block (double-buffered)
        ws += 2 * 2 * tk_ * inp_p * compute_itemsize  # W1 + W2^T K-tiles
        ws += 2 * tm_ * inp_p * out_itemsize          # output block
        if not f32_out:
            ws += tm_ * inp_p * 4                     # f32 accumulator scratch
        ws += tm_ * tk_ * 4                           # h intermediate
        ws += (inner_p + inp_p) * 4                   # resident biases
        return ws

    while working_set(tm, tk) > budget:
        smaller_tk = next((c for c in tk_cands if c < tk), None)
        if smaller_tk is not None:
            tk = smaller_tk
            continue
        if tm > 8 and m_p % (tm // 2) == 0:
            tm //= 2
            continue
        break
    return tm, tk


def feed_forward(x, params):
    """x: [..., inp_dim]; params: output of prepare_ffn_params."""
    inp_dim = params["inp_dim"]
    inp_p, inner_p = params["inp_p"], params["inner_p"]
    cdt = params["compute_dtype"]
    assert x.shape[-1] == inp_dim

    lead = x.shape[:-1]
    m = 1
    for d in lead:
        m *= d
    m_p = _round_up(m, 8)

    out_dtype = x.dtype
    f32_out = jnp.dtype(out_dtype) == jnp.dtype(jnp.float32)
    cdt_size = jnp.dtype(cdt).itemsize
    out_size = jnp.dtype(out_dtype).itemsize

    tm, tk = _pick_tiles(m_p, inner_p, inp_p, cdt_size, out_size, f32_out)
    grid = (m_p // tm, inner_p // tk)
    num_m_tiles = grid[0]

    x2 = x.reshape(m, inp_dim).astype(cdt)
    if m_p != m or inp_p != inp_dim:
        x2 = jnp.zeros((m_p, inp_p), cdt).at[:m, :inp_dim].set(x2)

    # Weights are re-streamed from HBM once per M tile; x read once, out written once.
    cost = pl.CostEstimate(
        flops=4 * m_p * inp_p * inner_p,
        transcendentals=0,
        bytes_accessed=(x2.size * cdt_size
                        + (params["w1"].size + params["w2t"].size) * cdt_size * num_m_tiles
                        + (params["b1"].size + params["b2"].size) * 4
                        + m_p * inp_p * out_size),
    )

    vmem_limit = int(min(_vmem_capacity_bytes() * 7 // 8, 100 * 2**20))

    kernel = functools.partial(ffn_kernel, tk=tk)
    scratch_shapes = [] if f32_out else [pltpu.VMEM((tm, inp_p), jnp.float32)]

    out = pl.pallas_call(
        kernel,
        out_shape=jax.ShapeDtypeStruct((m_p, inp_p), out_dtype),
        grid_spec=pltpu.PrefetchScalarGridSpec(
            num_scalar_prefetch=0,
            grid=grid,
            in_specs=[
                pl.BlockSpec((tm, inp_p), lambda i, k: (i, 0)),    # x tile (K-resident)
                pl.BlockSpec((tk, inp_p), lambda i, k: (k, 0)),    # W1 K-tile (row slab)
                pl.BlockSpec((1, inner_p), lambda i, k: (0, 0)),   # b1 (fully resident)
                pl.BlockSpec((tk, inp_p), lambda i, k: (k, 0)),    # W2^T K-tile (row slab)
                pl.BlockSpec((1, inp_p), lambda i, k: (0, 0)),     # b2 (resident)
            ],
            out_specs=pl.BlockSpec((tm, inp_p), lambda i, k: (i, 0)),
            scratch_shapes=scratch_shapes,
        ),
        compiler_params=pltpu.CompilerParams(
            dimension_semantics=("parallel", "arbitrary"),
            vmem_limit_bytes=vmem_limit,
        ),
        cost_estimate=cost,
    )(x2, params["w1"], params["b1"], params["w2t"], params["b2"])

    out = out[:m, :inp_dim]
    return out.reshape(*lead, inp_dim)


if __name__ == "__main__":
    # Small shapes consistent with the module; chosen so the kernel exercises
    # padding (inp_dim=40 -> 128), multiple M tiles and multiple K tiles.
    batch, seq, inp_dim, inner_dim = 2, 8, 40, 640

    key = jax.random.PRNGKey(0)
    kx, kw1, kb1, kw2, kb2 = jax.random.split(key, 5)

    x = jax.random.normal(kx, (batch, seq, inp_dim), dtype=jnp.float32)

    # PyTorch nn.Linear shapes: weight [out, in], bias [out].
    bound1 = 1.0 / (inp_dim ** 0.5)
    w1 = jax.random.uniform(kw1, (inner_dim, inp_dim), jnp.float32, -bound1, bound1)
    b1 = jax.random.uniform(kb1, (inner_dim,), jnp.float32, -bound1, bound1)
    bound2 = 1.0 / (inner_dim ** 0.5)
    w2 = jax.random.uniform(kw2, (inp_dim, inner_dim), jnp.float32, -bound2, bound2)
    b2 = jax.random.uniform(kb2, (inp_dim,), jnp.float32, -bound2, bound2)

    params = prepare_ffn_params(w1, b1, w2, b2)   # one-time prep (cast/transpose/pad)
    out = feed_forward(x, params)
    out = jax.block_until_ready(out)

    # Pure-JAX f32 reference (kernel uses bf16 MXU inputs -> loose tolerance).
    ref = jnp.maximum(x @ w1.T + b1, 0.0) @ w2.T + b2
    assert out.shape == (batch, seq, inp_dim)
    assert jnp.allclose(out, ref, atol=5e-2, rtol=5e-2), float(jnp.max(jnp.abs(out - ref)))

    print("KERNEL_OK")
</pallas_src>

<mosaic_0001>
module attributes {stable_mosaic.version = 11 : i64} {
  func.func @ffn_kernel(%arg0: i32, %arg1: i32, %arg2: memref<8x128xbf16, #tpu.memory_space<vmem>>, %arg3: memref<128x128xbf16, #tpu.memory_space<vmem>>, %arg4: memref<1x640xf32, #tpu.memory_space<vmem>>, %arg5: memref<128x128xbf16, #tpu.memory_space<vmem>>, %arg6: memref<1x128xf32, #tpu.memory_space<vmem>>, %arg7: memref<8x128xf32, #tpu.memory_space<vmem>>) attributes {dimension_semantics = [#tpu.dimension_semantics<parallel>, #tpu.dimension_semantics<arbitrary>], iteration_bounds = array<i64: 2, 5>, scalar_prefetch = 0 : i64, scratch_operands = 0 : i64, tpu.core_type = #tpu.core_type<tc>, window_params = [{transform_indices = @transform_0, window_bounds = array<i64: 8, 128>}, {transform_indices = @transform_1, window_bounds = array<i64: 128, 128>}, {pipeline_mode = #tpu.pipeline_mode<synchronous>, transform_indices = @transform_2, window_bounds = array<i64: 1, 640>}, {transform_indices = @transform_3, window_bounds = array<i64: 128, 128>}, {pipeline_mode = #tpu.pipeline_mode<synchronous>, transform_indices = @transform_4, window_bounds = array<i64: 1, 128>}, {transform_indices = @transform_5, window_bounds = array<i64: 8, 128>}]} {
    %c0_i32 = arith.constant 0 : i32
    %0 = arith.cmpi eq, %arg1, %c0_i32 : i32
    %1 = arith.extui %0 : i1 to i32
    %c0_i32_0 = arith.constant 0 : i32
    %2 = arith.cmpi ne, %1, %c0_i32_0 : i32
    scf.if %2 {
      %cst_14 = arith.constant 0.000000e+00 : f32
      %23 = vector.broadcast %cst_14 : f32 to vector<8x128xf32>
      %c0_15 = arith.constant 0 : index
      %c0_16 = arith.constant 0 : index
      %24 = vector.load %arg7[%c0_15, %c0_16] : memref<8x128xf32, #tpu.memory_space<vmem>>, vector<8x128xf32>
      tpu.vector_store %arg7[%c0_15, %c0_16], %23 {strides = array<i32>} : memref<8x128xf32, #tpu.memory_space<vmem>>, vector<8x128xf32>,
    } else {
    }
    %c0 = arith.constant 0 : index
    %c0_1 = arith.constant 0 : index
    %3 = vector.load %arg2[%c0, %c0_1] : memref<8x128xbf16, #tpu.memory_space<vmem>>, vector<8x128xbf16>
    %c0_2 = arith.constant 0 : index
    %c0_3 = arith.constant 0 : index
    %4 = vector.load %arg3[%c0_2, %c0_3] : memref<128x128xbf16, #tpu.memory_space<vmem>>, vector<128x128xbf16>
    %cst = arith.constant dense<0.000000e+00> : vector<8x128xf32>
    %5 = tpu.matmul %3, %4, %cst {dimension_numbers = #tpu.dot_dimension_numbers<[1], [1], [0], [0], [0, 0, 1, 0], [], []>} : vector<8x128xbf16>, vector<128x128xbf16>, vector<8x128xf32> -> vector<8x128xf32>
    %c128_i32 = arith.constant 128 : i32
    %6 = arith.muli %arg1, %c128_i32 : i32
    %7 = tpu.assume_multiple %6, 128 : i32
    %c0_4 = arith.constant 0 : index
    %8 = arith.index_cast %7 : i32 to index
    %9 = vector.load %arg4[%c0_4, %8] : memref<1x640xf32, #tpu.memory_space<vmem>>, vector<1x128xf32>
    %10 = vector.broadcast %9 : vector<1x128xf32> to vector<8x128xf32>
    %11 = arith.addf %5, %10 : vector<8x128xf32>
    %cst_5 = arith.constant 0.000000e+00 : f32
    %12 = vector.broadcast %cst_5 : f32 to vector<8x128xf32>
    %13 = arith.maximumf %11, %12 : vector<8x128xf32>
    %c0_6 = arith.constant 0 : index
    %c0_7 = arith.constant 0 : index
    %14 = vector.load %arg7[%c0_6, %c0_7] : memref<8x128xf32, #tpu.memory_space<vmem>>, vector<8x128xf32>
    %15 = arith.truncf %13 : vector<8x128xf32> to vector<8x128xbf16>
    %c0_8 = arith.constant 0 : index
    %c0_9 = arith.constant 0 : index
    %16 = vector.load %arg5[%c0_8, %c0_9] : memref<128x128xbf16, #tpu.memory_space<vmem>>, vector<128x128xbf16>
    %cst_10 = arith.constant dense<0.000000e+00> : vector<8x128xf32>
    %17 = tpu.matmul %15, %16, %cst_10 {dimension_numbers = #tpu.dot_dimension_numbers<[1], [0], [0], [1], [0, 0, 1, 1], [], []>} : vector<8x128xbf16>, vector<128x128xbf16>, vector<8x128xf32> -> vector<8x128xf32>
    %18 = arith.addf %14, %17 : vector<8x128xf32>
    %c0_11 = arith.constant 0 : index
    %c0_12 = arith.constant 0 : index
    %19 = vector.load %arg7[%c0_11, %c0_12] : memref<8x128xf32, #tpu.memory_space<vmem>>, vector<8x128xf32>
    tpu.vector_store %arg7[%c0_11, %c0_12], %18 {strides = array<i32>} : memref<8x128xf32, #tpu.memory_space<vmem>>, vector<8x128xf32>,
    %c4_i32 = arith.constant 4 : i32
    %20 = arith.cmpi eq, %arg1, %c4_i32 : i32
    %21 = arith.extui %20 : i1 to i32
    %c0_i32_13 = arith.constant 0 : i32
    %22 = arith.cmpi ne, %21, %c0_i32_13 : i32
    scf.if %22 {
      %c0_14 = arith.constant 0 : index
      %c0_15 = arith.constant 0 : index
      %23 = vector.load %arg7[%c0_14, %c0_15] : memref<8x128xf32, #tpu.memory_space<vmem>>, vector<8x128xf32>
      %c0_16 = arith.constant 0 : index
      %c0_17 = arith.constant 0 : index
      %24 = vector.load %arg6[%c0_16, %c0_17] : memref<1x128xf32, #tpu.memory_space<vmem>>, vector<1x128xf32>
      %25 = vector.broadcast %24 : vector<1x128xf32> to vector<8x128xf32>
      %26 = arith.addf %23, %25 : vector<8x128xf32>
      %c0_18 = arith.constant 0 : index
      %c0_19 = arith.constant 0 : index
      %27 = vector.load %arg7[%c0_18, %c0_19] : memref<8x128xf32, #tpu.memory_space<vmem>>, vector<8x128xf32>
      tpu.vector_store %arg7[%c0_18, %c0_19], %26 {strides = array<i32>} : memref<8x128xf32, #tpu.memory_space<vmem>>, vector<8x128xf32>,
    } else {
    }
    return
  }
  func.func @transform_0(%arg0: i32, %arg1: i32) -> (i32, i32) {
    %c0_i32 = arith.constant 0 : i32
    %c0_i32_0 = arith.constant 0 : i32
    return %arg0, %c0_i32 : i32, i32
  }
  func.func @transform_1(%arg0: i32, %arg1: i32) -> (i32, i32) {
    %c0_i32 = arith.constant 0 : i32
    %c0_i32_0 = arith.constant 0 : i32
    return %arg1, %c0_i32 : i32, i32
  }
  func.func @transform_2(%arg0: i32, %arg1: i32) -> (i32, i32) {
    %c0_i32 = arith.constant 0 : i32
    %c0_i32_0 = arith.constant 0 : i32
    %c0_i32_1 = arith.constant 0 : i32
    return %c0_i32, %c0_i32_0 : i32, i32
  }
  func.func @transform_3(%arg0: i32, %arg1: i32) -> (i32, i32) {
    %c0_i32 = arith.constant 0 : i32
    %c0_i32_0 = arith.constant 0 : i32
    return %arg1, %c0_i32 : i32, i32
  }
  func.func @transform_4(%arg0: i32, %arg1: i32) -> (i32, i32) {
    %c0_i32 = arith.constant 0 : i32
    %c0_i32_0 = arith.constant 0 : i32
    %c0_i32_1 = arith.constant 0 : i32
    return %c0_i32, %c0_i32_0 : i32, i32
  }
  func.func @transform_5(%arg0: i32, %arg1: i32) -> (i32, i32) {
    %c0_i32 = arith.constant 0 : i32
    %c0_i32_0 = arith.constant 0 : i32
    return %arg0, %c0_i32 : i32, i32
  }
}

</mosaic_0001>

<bundles_post_ra>
// kernel: tpu_custom_call.1
= control target key start
LH: loop header
LB: loop body
LE: loop exit
PB: predicated region body
PF: predicated region fallthrough
CT: control target
= control target key end

     0   :  { %s1594_s0 = inlined_call_operand.hbm [shape: bf16[16,128], index: 0, kind: input, shape index: {}]   ;;  %s1595_s1 = inlined_call_operand.hbm [shape: bf16[640,128], index: 1, kind: input, shape index: {}]   ;;  %s1596_s2 = inlined_call_operand.vmem [shape: f32[1,640], index: 2, kind: input, shape index: {}]   ;;  %s1597_s3 = inlined_call_operand.hbm [shape: bf16[640,128], index: 3, kind: input, shape index: {}]   ;;  %s1598_s4 = inlined_call_operand.vmem [shape: f32[1,128], index: 4, kind: input, shape index: {}]   ;;  %s1599_s5 = inlined_call_operand.hbm [shape: f32[16,128], index: 5, kind: output, shape index: {}]  }
   0x1   :  { %1615 = sst [smem:[#allocation19_spill]] %s1595_s1 }
   0x2   :  { %1616 = sst [smem:[#allocation20_spill]] %s1598_s4 }
   0x3   :  { %1617 = sst [smem:[#allocation21_spill]] %s1599_s5 }
   0x4   :  { %10 = vsyncpa [#allocation3], 0 }
   0x5   :  { %12 = vsyncpa [#allocation3 + $0x1], 0 }
   0x6   :  { %13 = vsyncpa [#allocation6], 0 }
   0x7   :  { %15 = vsyncpa [#allocation6 + $0x1], 0 }
   0x8   :  { %16 = vsyncpa [#allocation4], 0 }
   0x9   :  { %18 = vsyncpa [#allocation4 + $0x1], 0  ;;  %s1207_s18 = smov 0   ;;  %s1209_s19 = smov 0  }
   0xa   :  { %s1211_s20 = smov 0   ;;  %s1213_s21 = smov 0  }
   0xb   :  { %s1215_s22 = smov 0   ;;  %s1217_s23 = smov 0  }
   0xc   :  { %s1219_s24 = smov 0   ;;  %s1221_s25 = smov 0  }
   0xd   :  { %s1223_s26 = smov 0   ;;  %s1225_s27 = smov 0  }
   0xe   :  { %s1227_s28 = smov 0  }
   0xf LB: > { %1618 = sst [smem:[#allocation12_spill]] %s1134_s20  ;;  %s33_s29 = sadd.s32 1, %s1158_s26  ;;  %s1166_s28 = sphi %s1227_s28, %s24_s28   ;;  %s1162_s27 = sphi %s1225_s27, %s1655_s27   ;;  %s1158_s26 = sphi %s1223_s26, %s1661_s26   ;;  %s1154_s25 = sphi %s1221_s25, %s1653_s25   ;;  %s1150_s24 = sphi %s1219_s24, %s1652_s24   ;;  %s1146_s23 = sphi %s1217_s23, %s1660_s23   ;;  %s1142_s22 = sphi %s1215_s22, %s1659_s22   ;;  %s1138_s21 = sphi %s1213_s21, %s1658_s21   ;;  %s1134_s20 = sphi %s1211_s20, %s1651_s20   ;;  %s1130_s19 = sphi %s1209_s19, %s1657_s19   ;;  %s1126_s18 = sphi %s1207_s18, %s1656_s18  }
  0x10   : > { %1619 = sst [smem:[#allocation13_spill]] %s1154_s25  ;;  %p1603_p0 = scmp.eq.s32.totalorder %s1166_s28, 0 }
  0x11   : > { %1620 = sst [smem:[#allocation14_spill]] %s1158_s26  ;;  %p1264_p1 = scmp.ge.s32.totalorder %s33_s29, 5 }
  0x12   : > { %1621 = sst [smem:[#allocation15_spill]] %s1162_s27  ;;  %s69_s6 = sadd.s32 1, %s1134_s20 }
  0x13   : > { %p76_p2 = scmp.ne.s32.totalorder %s1134_s20, %s1130_s19  ;;  %s1663_s29 = smov (%p1264_p1, %s33_s29), 0 }
  0x14   : > { %1623 = sst [smem:[#allocation16_spill]] %s1663_s29  ;;  %s66_s7 = ssub.s32 %s1158_s26, %s1663_s29 }
  0x15   : > { %p78_p3 = por %p76_p2, %p1603_p0  ;;  %p1602_p4 = scmp.lt.s32.totalorder %s1166_s28, 10 }
  0x16   : > { %p67_p5 = scmp.eq.s32.totalorder %s66_s7, 0  ;;  %s224_s8 = sand.u32 1, %s1166_s28  }
  0x17   : > { %s226_s9 = sand.u32 1, %s1134_s20   ;;  %s1600_s12 = sshll.u32 %s1158_s26, 10 }
  0x18   : > { %s1283_s10 = scalar_select %p67_p5, %s1134_s20, %s69_s6  }
  0x19   : > { %s1285_s11 = sshll.u32 %s226_s9, 6  ;;  %s1625_s1 = sld [smem:[#allocation19_spill]] }
  0x1a   : > { %1624 = sst [smem:[#allocation17_spill]] %s1283_s10  ;;  %s228_s16 = scalar_lea.vmem [#allocation5], %s1285_s11 }
  0x1b   : > { %s235_s17 = sshll.u32 %s228_s16, 4  ;;  %p1298_p6 = pnand %p1602_p4, %p78_p3  ;;  %s1302_s17 = int_to_ptr.vmem [resolvable:$true] %s235_s17 }
  0x1c   : > { %s1304_s7 = scalar_lea.sflag [#allocation6], %s224_s8 }
  0x1d   : > { %p1604_p8 = pneg %p1298_p6 }
  0x1f   : > { %s1293_s15 = scalar_lea.hbm %s1625_s1, %s1600_s12  ;;  %s955_s16 = scalar_lea.hbm %s1625_s1, 5120 }
  0x20   : > { %s950_s9 = scalar_lea.hbm %s1293_s15, 1024  ;;  %p956_p11 = scmp.lt.u32.totalorder %s1293_s15, %s1625_s1 }
  0x21   : > { %p951_p7 = scmp.ne.s32.totalorder %s1293_s15, %s950_s9  ;;  %p957_p12 = scmp.lt.u32.totalorder %s955_s16, %s950_s9 }
  0x22   : > { %p959_p2 = scmp.lt.u32.totalorder %s950_s9, %s1293_s15 }
  0x23   : > { %p953_p9 = pnand %p1604_p8, %p951_p7  ;;  %p958_p13 = por %p957_p12, %p956_p11 }
  0x25   : > { %p954_p10 = pneg %p953_p9  ;;  %p960_p3 = por %p959_p2, %p958_p13 }
  0x27   : > { %p961_p5 = pnand %p960_p3, %p954_p10 }
  0x29   : > { %964 = shalt.err (!%p961_p5)
}
  0x2a   : > { %s965_s8 = scalar_lea.vmem %s1302_s17, 1024  ;;  %s1168_s13 = smov [#allocation5]  }
  0x2b   : > { %p966_p7 = scmp.ne.s32.totalorder %s1302_s17, %s965_s8  ;;  %s970_s14 = sshll.u32 %s1168_s13, 4  ;;  %s971_s14 = int_to_ptr.vmem [resolvable:$false] %s970_s14 }
  0x2c   : > { %s972_s29 = scalar_lea.vmem %s971_s14, 2048  ;;  %p973_p0 = scmp.lt.s32.totalorder %s1302_s17, %s971_s14 }
  0x2d   : > { %p968_p9 = pnand %p966_p7, %p1604_p8  ;;  %p974_p11 = scmp.lt.s32.totalorder %s972_s29, %s965_s8 }
  0x2f   : > { %p969_p4 = pneg %p968_p9  ;;  %p975_p12 = por %p974_p11, %p973_p0 }
  0x31   : > { %p976_p13 = pnand %p975_p12, %p969_p4 }
  0x33   : > { %979 = shalt.err (!%p976_p13)
}
  0x34   : > { %s1605_s12 = smov 64   ;;  %s1606_s9 = smov 4  }
  0x35   : > { %831 = dma.hbm_to_vmem [thread:$0]  (!%p1298_p6), %s1293_s15, 1024, %s1302_s17, %s1304_s7, %s1605_s12, %s1605_s12, %s1606_s9  }
  0x36   : > { %p82_p0 = scmp.ne.s32.totalorder %s1130_s19, %s1126_s18  ;;  %s1627_s16 = sshll.u32 %s1158_s26, 10 }
  0x37   : > { %s1342_s14 = scalar_lea.hbm %s1597_s3, %s1627_s16  ;;  %p727_p4 = scmp.ge.s32.totalorder %s1166_s28, 1 }
  0x38   : > { %s249_s29 = scalar_lea.vmem [#allocation7], %s1285_s11  ;;  %p264_p10 = scmp.lt.s32.totalorder %s1166_s28, 11 }
  0x39   : > { %s256_s1 = sshll.u32 %s249_s29, 4  ;;  %s1352_s15 = sadd.s32 4294967295, %s1166_s28   ;;  %s1419_s1 = int_to_ptr.vmem [resolvable:$true] %s256_s1 }
  0x3a   : > { %p1347_p2 = pnand %p727_p4, %p264_p10  ;;  %s716_s17 = sadd.s32 4294967294, %s1166_s28  }
  0x3b   : > { %s36_s16 = sadd.s32 1, %s1162_s27  ;;  %s43_s11 = sadd.s32 1, %s1146_s23 }
  0x3c   : > { %s1628_s10 = scalar_select %p1347_p2, 1, 0 }
  0x3d   : > { %s1665_s16 = smov (!%p1264_p1, %s36_s16), %s1162_s27  ;;  %p50_p3 = scmp.ne.s32.totalorder %s1146_s23, %s1142_s22 }
  0x3e   : > { %p38_p5 = scmp.ge.s32.totalorder %s1665_s16, 2  ;;  %p56_p7 = scmp.ne.s32.totalorder %s1142_s22, %s1138_s21 }
  0x3f   : > { %p1629_p9 = scmp.eq.s32.totalorder %s1166_s28, 0  ;;  %p57_p12 = scmp.eq.s32.totalorder %s1352_s15, 0 }
  0x40   : > { %s1667_s16 = smov (%p38_p5, %s1665_s16), 0  ;;  %p174_p4 = scmp.eq.s32.totalorder %s1352_s15, 9 }
  0x41   : > { %p1366_p11 = por %p1629_p9, %p50_p3  ;;  %1631 = sst [smem:[#allocation18_spill]] %s1667_s16 }
  0x42   : > { %p1376_p1 = por %p57_p12, %p56_p7  ;;  %p1383_p13 = por %p82_p0, %p57_p12 }
  0x43   : > { %s40_s29 = ssub.s32 %s1162_s27, %s1667_s16  ;;  %p180_p9 = scmp.eq.s32.totalorder %s716_s17, 9 }
  0x44   : > { %s1632_s30 = scalar_select %p1376_p1, 1, 0 }
  0x45   : > { %s1633_s13 = scalar_select %p1383_p13, 1, 0 }
  0x46   : > { %p41_p10 = scmp.eq.s32.totalorder %s40_s29, 0  ;;  %p1390_p8 = por %p174_p4, %p50_p3 }
  0x47   : > { %s206_s9 = sand.u32 1, %s1146_s23   ;;  %p1401_p5 = por %p180_p9, %p56_p7 }
  0x48   : > { %s1634_s12 = scalar_select %p1390_p8, 1, 0 }
  0x49   : > { %s1396_s26 = scalar_select %p41_p10, %s1146_s23, %s43_s11  }
  0x4a   : > { %s1635_s20 = scalar_select %p1401_p5, 1, 0 }
  0x4b   : > { %s719_s18 = sshll.u32 %s206_s9, 2  ;;  %s720_s5 = sshll.u32 %s1162_s27, 6 }
  0x4c   : > { %s1409_s16 = scalar_lea.hbm %s1594_s0, %s720_s5  ;;  %s210_s17 = scalar_lea.vmem [#allocation2], %s719_s18 }
  0x4d   : > { %s217_s29 = sshll.u32 %s210_s17, 4  ;;  %p1636_p0 = scmp.lt.s32.totalorder %s1166_s28, 10  ;;  %s1421_s29 = int_to_ptr.vmem [resolvable:$true] %s217_s29 }
  0x4e   : > { %s207_s4 = scalar_lea.sflag [#allocation3], %s206_s9  ;;  %s980_s5 = scalar_lea.hbm %s1409_s16, 64 }
  0x4f   : > { %p1415_p3 = pnand %p1636_p0, %p1366_p11  ;;  %p981_p7 = scmp.ne.s32.totalorder %s1409_s16, %s980_s5 }
  0x50   : > { %s985_s18 = scalar_lea.hbm %s1594_s0, 128  ;;  %p986_p11 = scmp.lt.u32.totalorder %s1409_s16, %s1594_s0 }
  0x51   : > { %p982_p12 = pneg %p1415_p3  ;;  %p987_p9 = scmp.lt.u32.totalorder %s985_s18, %s980_s5 }
  0x52   : > { %p989_p5 = scmp.lt.u32.totalorder %s980_s5, %s1409_s16 }
  0x53   : > { %p983_p4 = pnand %p982_p12, %p981_p7  ;;  %p988_p0 = por %p987_p9, %p986_p11 }
  0x55   : > { %p984_p10 = pneg %p983_p4  ;;  %p990_p8 = por %p989_p5, %p988_p0 }
  0x57   : > { %p991_p13 = pnand %p990_p8, %p984_p10 }
  0x59   : > { %994 = shalt.err (!%p991_p13)
}
  0x5a   : > { %s995_s9 = scalar_lea.vmem %s1421_s29, 64  ;;  %s1171_s25 = smov [#allocation2]  }
  0x5b   : > { %p996_p7 = scmp.ne.s32.totalorder %s1421_s29, %s995_s9  ;;  %s1000_s8 = sshll.u32 %s1171_s25, 4  ;;  %s1001_s8 = int_to_ptr.vmem [resolvable:$false] %s1000_s8 }
  0x5c   : > { %s1002_s27 = scalar_lea.vmem %s1001_s8, 128  ;;  %p1003_p2 = scmp.lt.s32.totalorder %s1421_s29, %s1001_s8 }
  0x5d   : > { %p998_p4 = pnand %p996_p7, %p982_p12  ;;  %p1004_p11 = scmp.lt.s32.totalorder %s1002_s27, %s995_s9 }
  0x5f   : > { %p999_p1 = pneg %p998_p4  ;;  %p1005_p9 = por %p1004_p11, %p1003_p2 }
  0x61   : > { %p1006_p5 = pnand %p1005_p9, %p999_p1 }
  0x63   : > { %1009 = shalt.err (!%p1006_p5)
}
  0x64   : > { %828 = dma.hbm_to_vmem [thread:$0]  (!%p1415_p3), %s1409_s16, 64, %s1421_s29, %s207_s4  }
  0x65   : > { %s1010_s5 = scalar_lea.hbm %s1342_s14, 1024  ;;  %p1638_p13 = pneg %p1298_p6 }
  0x66   : > { %p1011_p8 = scmp.ne.s32.totalorder %s1342_s14, %s1010_s5  ;;  %s1015_s9 = scalar_lea.hbm %s1597_s3, 5120 }
  0x67   : > { %p1016_p2 = scmp.lt.u32.totalorder %s1342_s14, %s1597_s3  ;;  %p1017_p1 = scmp.lt.u32.totalorder %s1015_s9, %s1010_s5 }
  0x68   : > { %p1013_p12 = pnand %p1011_p8, %p1638_p13  ;;  %p1019_p7 = scmp.lt.u32.totalorder %s1010_s5, %s1342_s14 }
  0x69   : > { %p1018_p0 = por %p1017_p1, %p1016_p2 }
  0x6a   : > { %p1014_p10 = pneg %p1013_p12 }
  0x6b   : > { %p1020_p4 = por %p1019_p7, %p1018_p0 }
  0x6d   : > { %p1021_p11 = pnand %p1020_p4, %p1014_p10 }
  0x6f   : > { %1024 = shalt.err (!%p1021_p11)
}
  0x70   : > { %s1025_s16 = scalar_lea.vmem %s1419_s1, 1024  ;;  %p1639_p9 = pmov %p1638_p13 }
  0x71   : > { %p1026_p3 = scmp.ne.s32.totalorder %s1419_s1, %s1025_s16  ;;  %s1172_s29 = smov [#allocation7]  }
  0x72   : > { %s1030_s4 = sshll.u32 %s1172_s29, 4  ;;  %s1031_s4 = int_to_ptr.vmem [resolvable:$false] %s1030_s4 }
  0x73   : > { %p1028_p5 = pnand %p1026_p3, %p1639_p9  ;;  %s1032_s8 = scalar_lea.vmem %s1031_s4, 2048 }
  0x74   : > { %p1033_p13 = scmp.lt.s32.totalorder %s1419_s1, %s1031_s4  ;;  %p1034_p12 = scmp.lt.s32.totalorder %s1032_s8, %s1025_s16 }
  0x75   : > { %p1029_p8 = pneg %p1028_p5 }
  0x76   : > { %p1035_p2 = por %p1034_p12, %p1033_p13 }
  0x78   : > { %p1036_p1 = pnand %p1035_p2, %p1029_p8 }
  0x7a   : > { %1039 = shalt.err (!%p1036_p1)
}
  0x7b   : > { %s1640_s27 = smov 4   ;;  %s1641_s5 = smov 64  }
  0x7c   : > { %834 = dma.hbm_to_vmem [thread:$0]  (!%p1298_p6), %s1342_s14, 1024, %s1419_s1, %s1304_s7, %s1641_s5, %s1641_s5, %s1640_s27  }
  0x7d   : > { %p1642_p10 = scmp.ne.s32.totalorder %s1628_s10, 0 }
  0x7e   : > { %s1478_s18 = sand.u32 (!%p1642_p10), 1, %s1142_s22   ;;  %p1643_p0 = scmp.ne.s32.totalorder (!%p1642_p10), %s1632_s30, 0 }
  0x7f   : > { %268 = sbr.rel (%p1642_p10) target bundleno = 685 (0x2ad), region = 40  ;;  %s728_s17 = sshll.u32 (!%p1642_p10), %s1478_s18, 2 }
  0x80   : > { %s271_s9 = scalar_lea.sflag (!%p1642_p10), [#allocation3], %s1478_s18  ;;  %s1482_s25 = scalar_lea.vmem (!%p1642_p10), [#allocation2], %s728_s17 }
  0x86   : > { %1113 = dma.done.wait (%p1643_p0), %s271_s9, 64  }
  0x87   : > { %1115 = vsyncadd (%p1643_p0), %s271_s9, 4294967232  ;;  %s279_s1 = sand.u32 1, %s1352_s15   ;;  %s281_s10 = sand.u32 1, %s1130_s19  }
  0x88   : > { %s729_s6 = sshll.u32 %s281_s10, 6  ;;  %s280_s7 = scalar_lea.sflag [#allocation6], %s279_s1 }
  0x89   : > { %s1490_s14 = scalar_lea.vmem [#allocation5], %s729_s6  ;;  %p1644_p6 = scmp.ne.s32.totalorder %s1633_s13, 0 }
  0x8b   : > { %1117 = dma.done.wait (%p1644_p6), %s280_s7, 2048  }
  0x8c   : > { %1119 = vsyncadd (%p1644_p6), %s280_s7, 4294965248  ;;  %s731_s11 = sshll.u32 %s1478_s18, 3  ;;  %s1497_s16 = scalar_lea.vmem [#allocation7], %s729_s6 }
  0x8d   : > { %s1499_s30 = scalar_lea.vmem [#allocation8], %s731_s11  ;;  %p732_p7 = scmp.ne.s32.totalorder %s1150_s24, 0 }
  0x8e   : > { %v1173_v0 = vmov (!%p732_p7), 0.0  }
  0x8f   : > { %335 = sbr.rel (%p732_p7) target bundleno = 150 (0x96), region = 56  ;;  %336 = vst [vmem:[%s1499_s30] sm:$0xff] (!%p732_p7), %v1173_v0 }
  0x96 PF: > { %v934_v1 = vld [vmem:[%s1490_s14] sm:$0xff]   ;;  %v1174_v2 = vmov 0.0   ;;  %vm1175_vm0 = vmmov 0   ;;  %v935_v3 = vld [vmem:[%s1490_s14 + $0x8] sm:$0xff]   ;;  %v936_v6 = vld [vmem:[%s1490_s14 + $0x10] sm:$0xff]   ;;  %s733_s15 = sshll.u32 %s1150_s24, 7 }
  0x97   : > { %777 = vmatprep.subr.bf16.mxu0 %v1174_v2  ;;  %797 = vmatprep.subr.bf16.mxu1 %v1174_v2  ;;  %v942_v4 = vld [vmem:[%s1497_s16] sm:$0xff]   ;;  %v943_v5 = vld [vmem:[%s1497_s16 + $0x8] sm:$0xff]   ;;  %v944_v7 = vld [vmem:[%s1497_s16 + $0x10] sm:$0xff]   ;;  %s355_s13 = sshra.s32 %s733_s15, 7  ;;  %p751_p4 = scmp.ne.s32.totalorder %s1150_s24, 4 }
  0x98   : > { %778 = vmatpush3.bf16.xpose.msra.mxu0 %v934_v1  ;;  %793 = vmatprep.mubr.msk.bf16.mxu0 %vm1175_vm0, %v1174_v2  ;;  %v945_v8 = vld [vmem:[%s1497_s16 + $0x18] sm:$0xff]   ;;  %v946_v10 = vld [vmem:[%s1497_s16 + $0x20] sm:$0xff]   ;;  %v947_v11 = vld [vmem:[%s1497_s16 + $0x28] sm:$0xff]   ;;  %s357_s8 = scalar_lea.vmem %s1596_s2, %s355_s13  ;;  %s1645_s17 = sld [smem:[#allocation20_spill]] (!%p751_p4) }
  0x99   : > { %779 = vmatprep.subr.bf16.mxu0 %v1174_v2  ;;  %813 = vmatprep.mubr.msk.bf16.mxu1 %vm1175_vm0, %v1174_v2  ;;  %v937_v9 = vld [vmem:[%s1490_s14 + $0x18] sm:$0xff]   ;;  %v938_v12 = vld [vmem:[%s1490_s14 + $0x20] sm:$0xff]   ;;  %v939_v13 = vld [vmem:[%s1490_s14 + $0x28] sm:$0xff]  }
  0x9a   : > { %798 = vmatpush3.bf16.msra.mxu1 %v942_v4  ;;  %v940_v14 = vld [vmem:[%s1490_s14 + $0x30] sm:$0xff]   ;;  %v941_v15 = vld [vmem:[%s1490_s14 + $0x38] sm:$0xff]   ;;  %v454_v27 = vld [vmem:[%s1499_s30] sm:$0xff] }
  0x9b   : > { %799 = vmatprep.subr.bf16.mxu1 %v1174_v2  ;;  %v337_v16 = vld [vmem:[%s1482_s25] sm:$0xf]  ;;  %v948_v17 = vld [vmem:[%s1497_s16 + $0x30] sm:$0xff]  }
  0x9c   : > { %v949_v18 = vld [vmem:[%s1497_s16 + $0x38] sm:$0xff]  }
  0x9d   : > { %v734_v19 = vld [vmem:[%s357_s8] ss:$0 sm:$0xff] }
  0x9e   : > { %800 = vmatpush3.bf16.msra.mxu1 %v943_v5  ;;  %v752_v34 = vld [vmem:[%s1645_s17] ss:$0 sm:$0xff] (!%p751_p4) }
  0x9f   : > { %801 = vmatprep.subr.bf16.mxu1 %v1174_v2 }
  0xa0   : > { %780 = vmatpush3.bf16.xpose.msra.mxu0 %v935_v3 }
  0xa1   : > { %781 = vmatprep.subr.bf16.mxu0 %v1174_v2 }
  0xa2   : > { %802 = vmatpush3.bf16.msra.mxu1 %v944_v7 }
  0xa3   : > { %803 = vmatprep.subr.bf16.mxu1 %v1174_v2 }
  0xa6   : > { %804 = vmatpush3.bf16.msra.mxu1 %v945_v8 }
  0xa7   : > { %805 = vmatprep.subr.bf16.mxu1 %v1174_v2 }
  0xa8   : > { %782 = vmatpush3.bf16.xpose.msra.mxu0 %v936_v6 }
  0xa9   : > { %783 = vmatprep.subr.bf16.mxu0 %v1174_v2 }
  0xaa   : > { %806 = vmatpush3.bf16.msra.mxu1 %v946_v10 }
  0xab   : > { %807 = vmatprep.subr.bf16.mxu1 %v1174_v2 }
  0xae   : > { %808 = vmatpush3.bf16.msra.mxu1 %v947_v11 }
  0xaf   : > { %809 = vmatprep.subr.bf16.mxu1 %v1174_v2 }
  0xb0   : > { %784 = vmatpush3.bf16.xpose.msra.mxu0 %v937_v9 }
  0xb1   : > { %785 = vmatprep.subr.bf16.mxu0 %v1174_v2 }
  0xb2   : > { %810 = vmatpush3.bf16.msra.mxu1 %v948_v17 }
  0xb3   : > { %811 = vmatprep.subr.bf16.mxu1 %v1174_v2 }
  0xb6   : > { %812 = vmatpush3.bf16.msra.mxu1 %v949_v18 }
  0xb8   : > { %786 = vmatpush3.bf16.xpose.msra.mxu0 %v938_v12 }
  0xb9   : > { %787 = vmatprep.subr.bf16.mxu0 %v1174_v2 }
  0xc0   : > { %788 = vmatpush3.bf16.xpose.msra.mxu0 %v939_v13 }
  0xc1   : > { %789 = vmatprep.subr.bf16.mxu0 %v1174_v2 }
  0xc8   : > { %790 = vmatpush3.bf16.xpose.msra.mxu0 %v940_v14 }
  0xc9   : > { %791 = vmatprep.subr.bf16.mxu0 %v1174_v2 }
  0xd0   : > { %792 = vmatpush3.bf16.xpose.msra.mxu0 %v941_v15 }
  0xd7   : > { %794 = vmatmul.mubr.bf16.vlgmr.msra.gmra.mrb[0].mxu0 %v337_v16 }
 0x1aa   : > { %v447_v20 = vpop.f32.mrb[0].mxu0 }
 0x1ab   : > { %v448_v21 = vadd.f32 %v734_v19, %v447_v20  ;;  %v795_v22 = vpop.f32.mrb[1].mxu0 }
 0x1ac   : > { %v450_v23 = vpop.f32.mrb[2].mxu0 }
 0x1ad   : > { %v453_v24 = vmax.f32 %v448_v21, 0.0  ;;  %v796_v25 = vpop.f32.mrb[3].mxu0 }
 0x1af   : > { %v455_v26 = vpack.c.bf16 %v453_v24, %v453_v24 }
 0x1b1   : > { %814 = vmatmul.mubr.bf16.vlgmr.msra.gmra.mrb[0].mxu1 %v455_v26 }
 0x281   : > { %565 = sbr.rel (%p751_p4) target bundleno = 658 (0x292), region = 60 }
 0x284   : > { %v554_v28 = vpop.f32.mrb[0].mxu1 }
 0x285   : > { %v560_v29 = vadd.f32 %v554_v28, %v454_v27  ;;  %v815_v30 = vpop.f32.mrb[1].mxu1 }
 0x286   : > { %v557_v31 = vpop.f32.mrb[2].mxu1 }
 0x287   : > { %561 = vst [vmem:[%s1499_s30] sm:$0xff] %v560_v29  ;;  %v816_v32 = vpop.f32.mrb[3].mxu1 }
 0x28e   : > { %v566_v33 = vld [vmem:[%s1499_s30] sm:$0xff] }
 0x28f   : > { %v574_v35 = vadd.f32 %v752_v34, %v566_v33 }
 0x291   : > { %575 = vst [vmem:[%s1499_s30] sm:$0xff] %v574_v35 }
 0x292 PF: > { %s1646_s9 = sld [smem:[#allocation13_spill]]  ;;  %s1647_s6 = sld [smem:[#allocation21_spill]] }
 0x293   : > { %s590_s7 = sshll.u32 %s1499_s30, 4  ;;  %s577_s14 = scalar_lea.sflag [#allocation4], %s1478_s18  ;;  %s591_s7 = int_to_ptr.vmem [resolvable:$true] %s590_s7 }
 0x294   : > { %s1040_s11 = scalar_lea.vmem %s591_s7, 128  ;;  %p1648_p3 = scmp.ne.s32.totalorder %s1634_s12, 0 }
 0x295   : > { %p1041_p11 = scmp.ne.s32.totalorder %s591_s7, %s1040_s11  ;;  %s1176_s16 = smov [#allocation8]  }
 0x296   : > { %s1044_s15 = sshll.u32 %s1176_s16, 4  ;;  %s1045_s15 = int_to_ptr.vmem [resolvable:$false] %s1044_s15 }
 0x297   : > { %p1042_p9 = pnand %p1041_p11, %p1648_p3  ;;  %s1046_s13 = scalar_lea.vmem %s1045_s15, 256 }
 0x298   : > { %s754_s25 = sshll.u32 %s1646_s9, 7  ;;  %p1047_p8 = scmp.lt.s32.totalorder %s591_s7, %s1045_s15 }
 0x299   : > { %s1536_s24 = scalar_lea.hbm %s1647_s6, %s754_s25  ;;  %p1043_p5 = pneg %p1042_p9 }
 0x29a   : > { %p1048_p13 = scmp.lt.s32.totalorder %s1046_s13, %s1040_s11 }
 0x29c   : > { %p1049_p12 = por %p1048_p13, %p1047_p8 }
 0x29e   : > { %p1050_p2 = pnand %p1049_p12, %p1043_p5 }
 0x2a0   : > { %1053 = shalt.err (!%p1050_p2)
}
 0x2a1   : > { %s1054_s18 = scalar_lea.hbm %s1536_s24, 128  ;;  %s1058_s4 = scalar_lea.hbm %s1647_s6, 256 }
 0x2a2   : > { %p1055_p1 = scmp.ne.s32.totalorder %s1536_s24, %s1054_s18  ;;  %p1059_p6 = scmp.lt.u32.totalorder %s1536_s24, %s1647_s6 }
 0x2a3   : > { %p1060_p7 = scmp.lt.u32.totalorder %s1058_s4, %s1054_s18  ;;  %p1062_p11 = scmp.lt.u32.totalorder %s1054_s18, %s1536_s24 }
 0x2a4   : > { %p1056_p10 = pnand %p1055_p1, %p1648_p3 }
 0x2a5   : > { %p1061_p4 = por %p1060_p7, %p1059_p6 }
 0x2a6   : > { %p1057_p0 = pneg %p1056_p10 }
 0x2a7   : > { %p1063_p9 = por %p1062_p11, %p1061_p4 }
 0x2a9   : > { %p1064_p5 = pnand %p1063_p9, %p1057_p0 }
 0x2ab   : > { %1067 = shalt.err (!%p1064_p5)
}
 0x2ac   : > { %823 = dma.vmem_to_hbm [thread:$0]  (%p1648_p3), %s591_s7, 128, %s1536_s24, %s577_s14  }
 0x2ad PF: > { %p840_p8 = scmp.ge.s32.totalorder %s1166_s28, 2  ;;  %s602_s5 = sand.u32 1, %s1138_s21  }
 0x2ae   : > { %p1649_p13 = scmp.ne.s32.totalorder %s1635_s20, 0  ;;  %s603_s17 = scalar_lea.sflag [#allocation4], %s602_s5 }
 0x2b0   : > { %p836_p12 = pnand %p840_p8, %p1649_p13 }
 0x2b2   : > { %1121 = dma.done.wait (!%p836_p12), %s603_s17, 128  }
 0x2b3   : > { %1123 = vsyncadd (!%p836_p12), %s603_s17, 4294967168  ;;  %s24_s28 = sadd.s32 1, %s1166_s28   ;;  %s1650_s9 = sld [smem:[#allocation12_spill]] }
 0x2b4   : > { %p21_p2 = scmp.ge.s32.totalorder %s24_s28, 12   ;;  %s1651_s20 = sld [smem:[#allocation17_spill]] }
 0x2b5   : > { %s1652_s24 = sld [smem:[#allocation14_spill]]  ;;  %s1653_s25 = sld [smem:[#allocation15_spill]] }
 0x2b6   : > { %s1654_s12 = sld [smem:[#allocation16_spill]]  ;;  %s1655_s27 = sld [smem:[#allocation18_spill]] }
 0x2b7   : > { %s1656_s18 = smov %s1130_s19  ;;  %s1658_s21 = smov %s1142_s22 }
 0x2b8   : > { %s1659_s22 = smov %s1146_s23  ;;  %s1660_s23 = smov %s1396_s26 }
 0x2b9   : > { %s1657_s19 = smov %s1650_s9  ;;  %23 = sbr.rel (!%p21_p2) target bundleno = 15 (0xf), region = 118 }
 0x2bc   : > { %s1661_s26 = smov %s1654_s12 }
 0x2c0   :  { %608 = vsyncpa [#allocation3], 1 }
 0x2c1   :  { %610 = vsyncpa [#allocation3 + $0x1], 1 }
 0x2c2   :  { %611 = vsyncpa [#allocation6], 1 }
 0x2c3   :  { %613 = vsyncpa [#allocation6 + $0x1], 1 }
 0x2c4   :  { %614 = vsyncpa [#allocation4], 1 }
 0x2c5   :  { %616 = vsyncpa [#allocation4 + $0x1], 1 }

</bundles_post_ra>
